<compile_context>
chip_gen: v7x
topology: tpu7x:2x2x1
jax: 0.10.0
libtpu: 0.0.40
codegen_flags: <defaults>
</compile_context>

<pallas_src>
import jax
import jax.numpy as jnp
from jax import lax
from jax.experimental import pallas as pl
from jax.experimental.pallas import tpu as pltpu


def attention_kernel(x_ref, w_att_t_ref, b_att_ref, w_ctx_ref, ctx_ref, attw_ref):
    x = x_ref[...]                                    # (TB, S, H)

    # scores = tanh(x @ W_att^T + b).  w_att_t is pre-transposed to (in, out),
    # so we contract x dim 2 with rhs dim 0 directly on the 3-D block
    # (no reshape, no in-kernel weight transpose).
    scores = jnp.tanh(
        lax.dot_general(
            x, w_att_t_ref[...],
            dimension_numbers=(((2,), (0,)), ((), ())),
            preferred_element_type=jnp.float32,
        )
        + b_att_ref[...]                              # (1, H) broadcast
    )                                                 # (TB, S, H) f32

    # Context projection (output width 1): VPU multiply + XLU lane reduce
    # instead of an N=1 MXU matmul.
    logits = jnp.sum(scores * w_ctx_ref[...], axis=-1)    # (TB, S), S on lane axis

    # Softmax over the sequence axis (lane axis -> lane reductions).
    m = jnp.max(logits, axis=-1, keepdims=True)
    e = jnp.exp(logits - m)
    denom = jnp.sum(e, axis=-1, keepdims=True)
    weights = e * pl.reciprocal(denom, approx=False)  # (TB, S), f32, exact

    # context = sum over seq of weights * x            -> (TB, H)
    ctx = jnp.sum(weights[:, :, None] * x.astype(jnp.float32), axis=1)

    ctx_ref[...] = ctx.astype(ctx_ref.dtype)          # (TB, H) slab store
    attw_ref[...] = weights.astype(attw_ref.dtype)    # (TB, S) lane-dense store


def _tpu_vmem_and_cores():
    """Per-generation VMEM capacity and TensorCores per chip (best effort)."""
    vmem_cap = 64 * 1024 * 1024   # conservative default (v7x physical VMEM)
    num_cores = 1                 # v5e / v6e have a single TensorCore per chip
    try:
        vmem_cap = int(pltpu.get_tpu_info().vmem_capacity_bytes)
    except Exception:
        pass
    try:
        kind = jax.devices()[0].device_kind.lower()
        if "v7" in kind:          # v7x: 2 TensorCores per chip
            num_cores = 2
    except Exception:
        pass
    return vmem_cap, num_cores


def _choose_tb(B, S, H, itemsize, num_cores, vmem_budget):
    """Batch-tile size.

    The kernel is HBM-bound for typical H, so target a big x slab (~4 MiB or
    >=1024 rows) subject to a VMEM budget that accounts for the f32
    intermediates, keep >=2 (and even) grid steps only on dual-TC parts,
    snap to a multiple of 8, and prefer a divisor of B near the target.
    """
    # Per-TB VMEM cost: x slab double-buffered + f32 intermediates (scores,
    # weighted product, possible f32 cast of x) + double-buffered output rows.
    per_tb = 2 * S * H * itemsize + 3 * S * H * 4 + 2 * (H + S) * itemsize
    fixed = 2 * H * H * itemsize + 4 * H * itemsize
    cap = max(1, (vmem_budget - fixed) // per_tb)

    rows_target = -(-1024 // S)                                   # >=1024 MXU rows
    bytes_target = max(1, (4 * 1024 * 1024) // (S * H * itemsize))  # ~4 MiB of x
    target = max(rows_target, bytes_target)
    target = min(target, cap, B)

    # Only dual-TC parts (v7x) benefit from >=2 grid steps on the parallel axis.
    if num_cores >= 2 and B >= 2:
        target = min(target, max(1, B // 2))

    # Sublane-aligned output slabs -> unmasked stores.
    if target >= 8:
        target = (target // 8) * 8
    target = max(1, target)

    # Prefer a divisor of B near the target (no padded tail block) ...
    best_div = 1
    for d in range(1, min(B, target) + 1):
        if B % d == 0:
            best_div = d
    if 2 * best_div > target:
        tb = best_div
    else:
        # ... otherwise use a non-divisor TB; the cdiv grid's padded tail
        # block is masked by Pallas on the store path.
        tb = target
    tb = max(1, min(tb, B))

    # v7x: balance the two TensorCores -- make the step count even.
    if num_cores >= 2:
        steps = -(-B // tb)
        if steps > 1 and steps % 2 == 1:
            tb = -(-B // (steps + 1))
            tb = max(1, min(tb, B))
    return tb


def attention_forward(lstm_output, w_att, b_att, w_ctx):
    """lstm_output: (B, S, H); w_att: (H, H) torch (out,in); b_att: (H,); w_ctx: (1, H)."""
    B, S, H = lstm_output.shape
    dtype = lstm_output.dtype
    itemsize = jnp.dtype(dtype).itemsize

    vmem_cap, num_cores = _tpu_vmem_and_cores()
    # Scoped-VMEM limit handed to the compiler (well above the 16/32 MiB
    # defaults, below physical), and a working-set budget with headroom.
    vmem_limit = int(min(vmem_cap * 3 // 4, 96 * 1024 * 1024))
    vmem_budget = vmem_limit * 4 // 5

    TB = _choose_tb(B, S, H, itemsize, num_cores, vmem_budget)
    steps = pl.cdiv(B, TB)

    # One-time host-side transforms (amortized over every grid step / call).
    w_att_t = jnp.transpose(w_att)                    # (in, out): rhs contracts on dim 0
    b_att_2d = b_att.reshape(1, H)                    # lane-dense bias row

    grid_spec = pltpu.PrefetchScalarGridSpec(
        num_scalar_prefetch=0,
        grid=(steps,),
        in_specs=[
            pl.BlockSpec((TB, S, H), lambda b: (b, 0, 0)),   # per-step slab of x
            pl.BlockSpec((H, H), lambda b: (0, 0)),          # resident W^T (in, out)
            pl.BlockSpec((1, H), lambda b: (0, 0)),          # bias row
            pl.BlockSpec((1, H), lambda b: (0, 0)),          # context vector row
        ],
        out_specs=[
            pl.BlockSpec((TB, H), lambda b: (b, 0)),         # context slab
            pl.BlockSpec((TB, S), lambda b: (b, 0)),         # attention weights (lane-dense)
        ],
    )

    context, attw_2d = pl.pallas_call(
        attention_kernel,
        grid_spec=grid_spec,
        out_shape=(
            jax.ShapeDtypeStruct((B, H), dtype),
            jax.ShapeDtypeStruct((B, S), dtype),
        ),
        compiler_params=pltpu.CompilerParams(
            dimension_semantics=("parallel",),
            vmem_limit_bytes=vmem_limit,
        ),
    )(lstm_output, w_att_t, b_att_2d, w_ctx)

    # Match the PyTorch module's (B, S, 1) attention-weights shape.
    return context, attw_2d[..., None]


def attention_reference(lstm_output, w_att, b_att, w_ctx):
    scores = jnp.tanh(jnp.einsum("bsh,oh->bso", lstm_output, w_att) + b_att)
    logits = jnp.einsum("bsh,oh->bso", scores, w_ctx)            # (B, S, 1)
    weights = jax.nn.softmax(logits, axis=1)
    context = jnp.sum(weights * lstm_output, axis=1)
    return context, weights


if __name__ == "__main__":
    B, S, H = 2, 8, 32  # batch, seq, hidden_dim

    key = jax.random.PRNGKey(0)
    kx, kw, kb, kc = jax.random.split(key, 4)

    # Deterministic synthetic parameters (PyTorch Linear shapes: (out, in)).
    bound = 1.0 / jnp.sqrt(H)
    x = jax.random.normal(kx, (B, S, H), dtype=jnp.float32)
    w_att = jax.random.uniform(kw, (H, H), minval=-bound, maxval=bound, dtype=jnp.float32)
    b_att = jax.random.uniform(kb, (H,), minval=-bound, maxval=bound, dtype=jnp.float32)
    w_ctx = jax.random.uniform(kc, (1, H), minval=-bound, maxval=bound, dtype=jnp.float32)

    ctx, attw = attention_forward(x, w_att, b_att, w_ctx)
    jax.block_until_ready((ctx, attw))

    ctx_ref, attw_ref = attention_reference(x, w_att, b_att, w_ctx)
    assert ctx.shape == (B, H) and attw.shape == (B, S, 1)
    assert jnp.allclose(ctx, ctx_ref, atol=1e-5, rtol=1e-5)
    assert jnp.allclose(attw, attw_ref, atol=1e-5, rtol=1e-5)

    print("KERNEL_OK")
</pallas_src>

<mosaic_0001>
module attributes {stable_mosaic.version = 11 : i64} {
  func.func @attention_kernel(%arg0: i32, %arg1: memref<2x8x32xf32, #tpu.memory_space<vmem>>, %arg2: memref<32x32xf32, #tpu.memory_space<vmem>>, %arg3: memref<1x32xf32, #tpu.memory_space<vmem>>, %arg4: memref<1x32xf32, #tpu.memory_space<vmem>>, %arg5: memref<2x32xf32, #tpu.memory_space<vmem>>, %arg6: memref<2x8xf32, #tpu.memory_space<vmem>>) attributes {dimension_semantics = [#tpu.dimension_semantics<parallel>], iteration_bounds = array<i64: 1>, scalar_prefetch = 0 : i64, scratch_operands = 0 : i64, tpu.core_type = #tpu.core_type<tc>, window_params = [{transform_indices = @transform_0, window_bounds = array<i64: 2, 8, 32>}, {pipeline_mode = #tpu.pipeline_mode<synchronous>, transform_indices = @transform_1, window_bounds = array<i64: 32, 32>}, {pipeline_mode = #tpu.pipeline_mode<synchronous>, transform_indices = @transform_2, window_bounds = array<i64: 1, 32>}, {pipeline_mode = #tpu.pipeline_mode<synchronous>, transform_indices = @transform_3, window_bounds = array<i64: 1, 32>}, {transform_indices = @transform_4, window_bounds = array<i64: 2, 32>}, {transform_indices = @transform_5, window_bounds = array<i64: 2, 8>}]} {
    %c0 = arith.constant 0 : index
    %c0_0 = arith.constant 0 : index
    %c0_1 = arith.constant 0 : index
    %0 = vector.load %arg1[%c0, %c0_0, %c0_1] : memref<2x8x32xf32, #tpu.memory_space<vmem>>, vector<2x8x32xf32>
    %c0_2 = arith.constant 0 : index
    %c0_3 = arith.constant 0 : index
    %1 = vector.load %arg2[%c0_2, %c0_3] : memref<32x32xf32, #tpu.memory_space<vmem>>, vector<32x32xf32>
    %cst = arith.constant dense<0.000000e+00> : vector<2x8x32xf32>
    %2 = tpu.matmul %0, %1, %cst {dimension_numbers = #tpu.dot_dimension_numbers<[2], [0], [0, 1], [1], [0, 0, 0, 1, 1, 1], [], []>} : vector<2x8x32xf32>, vector<32x32xf32>, vector<2x8x32xf32> -> vector<2x8x32xf32>
    %c0_4 = arith.constant 0 : index
    %c0_5 = arith.constant 0 : index
    %3 = vector.load %arg3[%c0_4, %c0_5] : memref<1x32xf32, #tpu.memory_space<vmem>>, vector<1x32xf32>
    %4 = vector.shape_cast %3 : vector<1x32xf32> to vector<1x1x32xf32>
    %5 = vector.broadcast %4 : vector<1x1x32xf32> to vector<2x8x32xf32>
    %6 = arith.addf %2, %5 : vector<2x8x32xf32>
    %7 = math.tanh %6 : vector<2x8x32xf32>
    %c0_6 = arith.constant 0 : index
    %c0_7 = arith.constant 0 : index
    %8 = vector.load %arg4[%c0_6, %c0_7] : memref<1x32xf32, #tpu.memory_space<vmem>>, vector<1x32xf32>
    %9 = vector.shape_cast %8 : vector<1x32xf32> to vector<1x1x32xf32>
    %10 = vector.broadcast %9 : vector<1x1x32xf32> to vector<2x8x32xf32>
    %11 = arith.mulf %7, %10 : vector<2x8x32xf32>
    %cst_8 = arith.constant dense<0.000000e+00> : vector<2x8xf32>
    %12 = vector.multi_reduction <add>, %11, %cst_8 [2] : vector<2x8x32xf32> to vector<2x8xf32>
    %cst_9 = arith.constant dense<0xFF800000> : vector<2xf32>
    %13 = vector.multi_reduction <maximumf>, %12, %cst_9 [1] : vector<2x8xf32> to vector<2xf32>
    %14 = vector.shape_cast %13 : vector<2xf32> to vector<2x1xf32>
    %15 = vector.broadcast %14 : vector<2x1xf32> to vector<2x8xf32>
    %16 = arith.subf %12, %15 : vector<2x8xf32>
    %17 = math.exp %16 : vector<2x8xf32>
    %cst_10 = arith.constant dense<0.000000e+00> : vector<2xf32>
    %18 = vector.multi_reduction <add>, %17, %cst_10 [1] : vector<2x8xf32> to vector<2xf32>
    %19 = vector.shape_cast %18 : vector<2xf32> to vector<2x1xf32>
    %20 = tpu.reciprocal %19 : vector<2x1xf32> -> vector<2x1xf32>
    %21 = vector.broadcast %20 : vector<2x1xf32> to vector<2x8xf32>
    %22 = arith.mulf %17, %21 : vector<2x8xf32>
    %23 = vector.shape_cast %22 : vector<2x8xf32> to vector<2x8x1xf32>
    %24 = vector.broadcast %23 : vector<2x8x1xf32> to vector<2x8x32xf32>
    %25 = arith.mulf %24, %0 : vector<2x8x32xf32>
    %cst_11 = arith.constant dense<0.000000e+00> : vector<2x32xf32>
    %26 = vector.multi_reduction <add>, %25, %cst_11 [1] : vector<2x8x32xf32> to vector<2x32xf32>
    %c0_12 = arith.constant 0 : index
    %c0_13 = arith.constant 0 : index
    %27 = vector.load %arg5[%c0_12, %c0_13] : memref<2x32xf32, #tpu.memory_space<vmem>>, vector<2x32xf32>
    tpu.vector_store %arg5[%c0_12, %c0_13], %26 {strides = array<i32>} : memref<2x32xf32, #tpu.memory_space<vmem>>, vector<2x32xf32>,
    %c0_14 = arith.constant 0 : index
    %c0_15 = arith.constant 0 : index
    %28 = vector.load %arg6[%c0_14, %c0_15] : memref<2x8xf32, #tpu.memory_space<vmem>>, vector<2x8xf32>
    tpu.vector_store %arg6[%c0_14, %c0_15], %22 {strides = array<i32>} : memref<2x8xf32, #tpu.memory_space<vmem>>, vector<2x8xf32>,
    return
  }
  func.func @transform_0(%arg0: i32) -> (i32, i32, i32) {
    %c0_i32 = arith.constant 0 : i32
    %c0_i32_0 = arith.constant 0 : i32
    %c0_i32_1 = arith.constant 0 : i32
    return %arg0, %c0_i32, %c0_i32_0 : i32, i32, i32
  }
  func.func @transform_1(%arg0: i32) -> (i32, i32) {
    %c0_i32 = arith.constant 0 : i32
    %c0_i32_0 = arith.constant 0 : i32
    %c0_i32_1 = arith.constant 0 : i32
    return %c0_i32, %c0_i32_0 : i32, i32
  }
  func.func @transform_2(%arg0: i32) -> (i32, i32) {
    %c0_i32 = arith.constant 0 : i32
    %c0_i32_0 = arith.constant 0 : i32
    %c0_i32_1 = arith.constant 0 : i32
    return %c0_i32, %c0_i32_0 : i32, i32
  }
  func.func @transform_3(%arg0: i32) -> (i32, i32) {
    %c0_i32 = arith.constant 0 : i32
    %c0_i32_0 = arith.constant 0 : i32
    %c0_i32_1 = arith.constant 0 : i32
    return %c0_i32, %c0_i32_0 : i32, i32
  }
  func.func @transform_4(%arg0: i32) -> (i32, i32) {
    %c0_i32 = arith.constant 0 : i32
    %c0_i32_0 = arith.constant 0 : i32
    return %arg0, %c0_i32 : i32, i32
  }
  func.func @transform_5(%arg0: i32) -> (i32, i32) {
    %c0_i32 = arith.constant 0 : i32
    %c0_i32_0 = arith.constant 0 : i32
    return %arg0, %c0_i32 : i32, i32
  }
}

</mosaic_0001>

<bundles_post_ra>
// kernel: tpu_custom_call.1
= control target key start
LH: loop header
LB: loop body
LE: loop exit
PB: predicated region body
PF: predicated region fallthrough
CT: control target
= control target key end

     0   :  { %11 = vsyncpa [#allocation3], 0  ;;  %s561_s0 = inlined_call_operand.hbm [shape: f32[2,8,32], index: 0, kind: input, shape index: {}]   ;;  %s562_s1 = inlined_call_operand.hbm [shape: f32[32,32], index: 1, kind: input, shape index: {}]   ;;  %s563_s2 = inlined_call_operand.vmem [shape: f32[1,32], index: 2, kind: input, shape index: {}]   ;;  %s564_s3 = inlined_call_operand.vmem [shape: f32[1,32], index: 3, kind: input, shape index: {}]   ;;  %s565_s4 = inlined_call_operand.hbm [shape: f32[2,32], index: 4, kind: output, shape index: {0}]   ;;  %s566_s5 = inlined_call_operand.hbm [shape: f32[2,8], index: 5, kind: output, shape index: {1}]  }
   0x1   :  { %12 = vsyncpa [#allocation6], 0 }
   0x2   :  { %13 = vsyncpa [#allocation4], 0 }
   0x3   :  { %14 = vsyncpa [#allocation9], 0  ;;  %s449_s18 = smov [#allocation2]   ;;  %s353_s22 = scalar_lea.hbm %s561_s0, 256 }
   0x4   :  { %s20_s19 = sshll.u32 %s449_s18, 4  ;;  %p354_p0 = scmp.ne.s32.totalorder %s561_s0, %s353_s22  ;;  %s21_s19 = int_to_ptr.vmem [resolvable:$true] %s20_s19 }
   0x5   :  { %p357_p1 = scmp.lt.u32.totalorder %s353_s22, %s561_s0 }
   0x7   :  { %p359_p2 = pnand %p357_p1, %p354_p0 }
   0x9   :  { %362 = shalt.err (!%p359_p2)
}
   0xa   :  { %s363_s27 = scalar_lea.vmem %s21_s19, 256  ;;  %p368_p4 = scmp.lt.s32.totalorder %s21_s19, %s21_s19 }
   0xb   :  { %p364_p3 = scmp.ne.s32.totalorder %s21_s19, %s363_s27  ;;  %p369_p5 = scmp.lt.s32.totalorder %s363_s27, %s363_s27 }
   0xd   :  { %p370_p6 = por %p369_p5, %p368_p4 }
   0xf   :  { %p371_p7 = pnand %p370_p6, %p364_p3 }
  0x11   :  { %374 = shalt.err (!%p371_p7)
}
  0x12   :  { %s450_s28 = smov 128   ;;  %s451_s29 = smov 8  }
  0x13   :  { %26 = dma.hbm_to_vmem [thread:$0]  %s561_s0, 256, %s21_s19, [#allocation3], %s450_s28, %s450_s28, %s451_s29  }
  0x14   :  { %s452_s7 = smov [#allocation5]   ;;  %s375_s11 = scalar_lea.hbm %s562_s1, 512 }
  0x15   :  { %s32_s8 = sshll.u32 %s452_s7, 4  ;;  %p376_p8 = scmp.ne.s32.totalorder %s562_s1, %s375_s11  ;;  %s33_s8 = int_to_ptr.vmem [resolvable:$true] %s32_s8 }
  0x16   :  { %p379_p9 = scmp.lt.u32.totalorder %s375_s11, %s562_s1 }
  0x18   :  { %p381_p10 = pnand %p379_p9, %p376_p8 }
  0x1a   :  { %384 = shalt.err (!%p381_p10)
}
  0x1b   :  { %s385_s16 = scalar_lea.vmem %s33_s8, 512  ;;  %p390_p12 = scmp.lt.s32.totalorder %s33_s8, %s33_s8 }
  0x1c   :  { %p386_p11 = scmp.ne.s32.totalorder %s33_s8, %s385_s16  ;;  %p391_p13 = scmp.lt.s32.totalorder %s385_s16, %s385_s16 }
  0x1e   :  { %p392_p0 = por %p391_p13, %p390_p12 }
  0x20   :  { %p393_p1 = pnand %p392_p0, %p386_p11 }
  0x22   :  { %396 = shalt.err (!%p393_p1)
}
  0x23   :  { %38 = dma.hbm_to_vmem [thread:$0]  %s562_s1, 512, %s33_s8, [#allocation6], %s450_s28, %s450_s28, %s451_s29  }
  0x24   :  { %441 = dma.done.wait [#allocation3], 256  }
  0x25   :  { %442 = vsyncadd [#allocation3], 4294967040 }
  0x26   :  { %443 = dma.done.wait [#allocation6], 512  }
  0x27   :  { %444 = vsyncadd [#allocation6], 4294966784  ;;  %vm62_vm0 = vcmask 261120   ;;  %v51_v0 = vld [vmem:[#allocation5] sm:$0xff]  ;;  %v52_v1 = vld [vmem:[#allocation5 + $0x8] sm:$0xff]  ;;  %v163_v20 = vlaneseq  ;;  %vm173_vm1 = vcmask 1041409  }
  0x28   :  { %v53_v2 = vld [vmem:[#allocation5 + $0x10] sm:$0xff]  ;;  %v326_v3 = vpack.c.bf16 %v52_v1, %v51_v0  ;;  %v54_v4 = vld [vmem:[#allocation5 + $0x18] sm:$0xff]  ;;  %vm176_vm2 = vcmask 58368   ;;  %v453_v30 = vmov 0  }
  0x29   :  { %v510_v5 = vld [vmem:[#allocation2] sm:$0xff]  ;;  %v330_v6 = vpack.c.bf16 %v54_v4, %v53_v2  ;;  %v514_v7 = vld [vmem:[#allocation2 + $0x8] sm:$0xff]  ;;  %v164_v21 = vand.u32 127, %v163_v20  ;;  %v166_v22 = vshrl.u32 %v163_v20, 7  ;;  %342 = vset.pattern.permute.xlu0 %v453_v30  ;;  %341 = vset.pattern.permute.xlu1 %v453_v30 }
  0x2a   :  { %323 = vmatprep.mubr.msk.f32.mxu0 %vm62_vm0, %v510_v5  ;;  %327 = vmatprep.subr.bf16.mxu0 %v326_v3  ;;  %v305_v8 = vld [vmem:[%s563_s2] ss:$0 sm:$0xff]  ;;  %s454_s2 = smov [#allocation8]  }
  0x2b   :  { %329 = vmatpush3.bf16.msra.mxu0 %v326_v3  ;;  %v308_v13 = vld [vmem:[%s564_s3] ss:$0 sm:$0xff]  ;;  %v167_v24 = vsub.s32 %v164_v21, %v166_v22  ;;  %v183_v31 = vsub.s32 0, %v166_v22  ;;  %v187_v32 = vsub.s32 1, %v166_v22  ;;  %s291_s3 = sshll.u32 %s454_s2, 4  ;;  %s292_s3 = int_to_ptr.vmem [resolvable:$true] %s291_s3 }
  0x2c   :  { %331 = vmatprep.subr.bf16.mxu0 %v330_v6  ;;  %s397_s21 = scalar_lea.vmem %s292_s3, 32  ;;  %p402_p3 = scmp.lt.s32.totalorder %s292_s3, %s292_s3 }
  0x2d   :  { %p398_p2 = scmp.ne.s32.totalorder %s292_s3, %s397_s21  ;;  %p403_p4 = scmp.lt.s32.totalorder %s397_s21, %s397_s21 }
  0x2f   :  { %333 = vmatpush3.bf16.msra.mxu0 %v330_v6  ;;  %p404_p5 = por %p403_p4, %p402_p3 }
  0x31   :  { %p405_p6 = pnand %p404_p5, %p398_p2 }
  0x32   :  { %324 = vmatmul.mubr.msk.f32.vlgmr.msra.gmra.mrb[0].mxu0 %vm62_vm0, %v514_v7 }
 0x105   :  { %v325_v9 = vpop.f32.mrb[0].mxu0 }
 0x106   :  { %v141_v10 = vadd.f32 %v325_v9, %v305_v8  ;;  %v135_v11 = vpop.f32.mrb[1].mxu0 }
 0x107   :  { %v136_v12 = vadd.f32 %v305_v8, %v135_v11 }
 0x108   :  { %343 = vtanh.f32 %v141_v10 }
 0x109   :  { %345 = vtanh.f32 %v136_v12 }
 0x112   :  { %v344_v14 = vpop.eup %343 }
 0x113   :  { %v346_v15 = vpop.eup %345  ;;  %v154_v18 = vmul.f32 %v344_v14, %v308_v13 }
 0x114   :  { %v153_v16 = vmul.f32 %v346_v15, %v308_v13 }
 0x115   :  { %v158_v19 = vsel %vm62_vm0, %v154_v18, 0.0 }
 0x116   :  { %v155_v17 = vsel %vm62_vm0, %v153_v16, 0.0 }
 0x117   :  { %156 = vadd.xlane.f32.xlu0 %v155_v17 }
 0x11b   :  { %159 = vadd.xlane.f32.xlu0 %v158_v19 }
 0x1a4   :  { %v157_v23 = vpop.xlane.xlu0 %156 }
 0x1a5   :  { %v168_v26 = vrot.slane %v157_v23, %v167_v24 }
 0x1a8   :  { %v160_v25 = vpop.xlane.xlu0 %159 }
 0x1a9   :  { %v172_v27 = vrot.slane %v160_v25, %v167_v24 }
 0x1ab   :  { %v174_v28 = vsel %vm173_vm1, %v172_v27, %v168_v26 }
 0x1ac   :  { %v177_v29 = vsel %vm176_vm2, %v174_v28, -inf }
 0x1ad   :  { %178 = vmax.xlane.f32.xlu1 %v177_v29 }
 0x23a   :  { %v179_v33 = vpop.xlane.xlu1 %178 }
 0x23b   :  { %v184_v34 = vrot.slane %v179_v33, %v183_v31  ;;  %v188_v35 = vrot.slane %v179_v33, %v187_v32 }
 0x23d   :  { %v191_v36 = vsub.f32 %v157_v23, %v184_v34  ;;  %v192_v37 = vsub.f32 %v160_v25, %v188_v35 }
 0x23f   :  { %v193_v38 = vmul.f32 1.442695, %v191_v36  ;;  %v195_v39 = vmul.f32 1.442695, %v192_v37 }
 0x241   :  { %347 = vpow2.f32 %v193_v38 }
 0x242   :  { %349 = vpow2.f32 %v195_v39 }
 0x24b   :  { %v348_v40 = vpop.eup %347 }
 0x24c   :  { %v350_v41 = vpop.eup %349  ;;  %200 = vperm.xlu1 %341, %v348_v40  }
 0x24d   :  { %203 = vperm.xlu0 %342, %v350_v41  }
 0x2cb   :  { %v201_v42 = vpop.permute.xlu1 %200 }
 0x2cc   :  { %v204_v43 = vpop.permute.xlu0 %203  ;;  %v208_v44 = vrot.slane %v201_v42, %v167_v24 }
 0x2cd   :  { %v212_v45 = vrot.slane %v204_v43, %v167_v24 }
 0x2cf   :  { %v213_v46 = vsel %vm173_vm1, %v212_v45, %v208_v44 }
 0x2d0   :  { %v215_v47 = vsel %vm176_vm2, %v213_v46, 0.0 }
 0x2d1   :  { %216 = vadd.xlane.f32.xlu1 %v215_v47 }
 0x35e   :  { %v217_v48 = vpop.xlane.xlu1 %216 }
 0x35f   :  { %351 = vrcp.f32 %v217_v48 }
 0x369   :  { %v352_v49 = vpop.eup %351 }
 0x36a   :  { %v223_v50 = vrot.slane %v352_v49, %v183_v31  ;;  %v227_v52 = vrot.slane %v352_v49, %v187_v32 }
 0x36c   :  { %v230_v51 = vmul.f32 %v348_v40, %v223_v50  ;;  %v231_v53 = vmul.f32 %v350_v41, %v227_v52 }
 0x36e   :  { %234 = vperm.xlu0 %342, %v230_v51  }
 0x372   :  { %239 = vperm.xlu0 %342, %v231_v53  }
 0x3ed   :  { %v235_v54 = vpop.permute.xlu0 %234 }
 0x3ee   :  { %v242_v55 = vmul.f32 %v235_v54, %v510_v5  ;;  %v267_v59 = vrot.slane %v235_v54, %v167_v24 }
 0x3f0   :  { %v244_v56 = vsel %vm62_vm0, %v242_v55, 0.0 }
 0x3f1   :  { %v245_v57 = vrot.slane %v244_v56, 4  ;;  %v240_v58 = vpop.permute.xlu0 %239 }
 0x3f2   :  { %v243_v60 = vmul.f32 %v240_v58, %v514_v7  ;;  %v271_v61 = vrot.slane %v240_v58, %v167_v24 }
 0x3f3   :  { %v246_v62 = vadd.f32 %v245_v57, %v244_v56 }
 0x3f4   :  { %v251_v63 = vsel %vm62_vm0, %v243_v60, 0.0  ;;  %v272_v0 = vsel %vm173_vm1, %v271_v61, %v267_v59 }
 0x3f5   :  { %v247_v1 = vrot.slane %v246_v62, 2  ;;  %v252_v2 = vrot.slane %v251_v63, 4  ;;  %274 = vst.msk [vmem:[#allocation8] sm:$0x3] %vm176_vm2, %v272_v0 }
 0x3f6   :  { %408 = shalt.err (!%p405_p6)
}
 0x3f7   :  { %s409_s24 = scalar_lea.hbm %s566_s5, 32 }
 0x3f8   :  { %p410_p7 = scmp.ne.s32.totalorder %s566_s5, %s409_s24  ;;  %p413_p8 = scmp.lt.u32.totalorder %s409_s24, %s566_s5 }
 0x3fa   :  { %p415_p9 = pnand %p413_p8, %p410_p7 }
 0x3fc   :  { %418 = shalt.err (!%p415_p9)
}
 0x3fd   :  { %294 = dma.vmem_to_hbm [thread:$0]  %s292_s3, 32, %s566_s5, [#allocation9]   ;;  %v248_v3 = vadd.f32 %v247_v1, %v246_v62  ;;  %v253_v4 = vadd.f32 %v252_v2, %v251_v63  ;;  %vm262_vm3 = vcmask 254976  }
 0x3fe   :  { %s455_s6 = smov [#allocation7]  }
 0x3ff   :  { %v254_v5 = vrot.slane %v253_v4, 2  ;;  %v249_v6 = vrot.slane %v248_v3, 1  ;;  %s281_s7 = sshll.u32 %s455_s6, 4  ;;  %s282_s7 = int_to_ptr.vmem [resolvable:$true] %s281_s7 }
 0x400   :  { %s419_s8 = scalar_lea.vmem %s282_s7, 32  ;;  %p424_p11 = scmp.lt.s32.totalorder %s282_s7, %s282_s7 }
 0x401   :  { %v255_v7 = vadd.f32 %v254_v5, %v253_v4  ;;  %v250_v10 = vadd.f32 %v249_v6, %v248_v3  ;;  %p420_p10 = scmp.ne.s32.totalorder %s282_s7, %s419_s8  ;;  %p425_p12 = scmp.lt.s32.totalorder %s419_s8, %s419_s8 }
 0x403   :  { %v256_v8 = vrot.slane %v255_v7, 1  ;;  %p426_p13 = por %p425_p12, %p424_p11 }
 0x405   :  { %v257_v9 = vadd.f32 %v256_v8, %v255_v7  ;;  %p427_p0 = pnand %p426_p13, %p420_p10 }
 0x407   :  { %v260_v11 = vsel %vm173_vm1, %v257_v9, %v250_v10 }
 0x408   :  { %263 = vst.msk [vmem:[#allocation7] sm:$0x3] %vm262_vm3, %v260_v11 }
 0x409   :  { %430 = shalt.err (!%p427_p0)
}
 0x40a   :  { %s431_s10 = scalar_lea.hbm %s565_s4, 32 }
 0x40b   :  { %p432_p1 = scmp.ne.s32.totalorder %s565_s4, %s431_s10  ;;  %p435_p2 = scmp.lt.u32.totalorder %s431_s10, %s565_s4 }
 0x40d   :  { %p437_p3 = pnand %p435_p2, %p432_p1 }
 0x40f   :  { %440 = shalt.err (!%p437_p3)
}
 0x410   :  { %284 = dma.vmem_to_hbm [thread:$0]  %s282_s7, 32, %s565_s4, [#allocation4]  }
 0x411   :  { %445 = dma.done.wait [#allocation4], 32  }
 0x412   :  { %446 = vsyncadd [#allocation4], 4294967264 }
 0x413   :  { %447 = dma.done.wait [#allocation9], 32  }
 0x414   :  { %448 = vsyncadd [#allocation9], 4294967264 }
 0x415   :  { %301 = vsyncpa [#allocation3], 1 }
 0x416   :  { %302 = vsyncpa [#allocation6], 1 }
 0x417   :  { %303 = vsyncpa [#allocation4], 1 }
 0x418   :  { %304 = vsyncpa [#allocation9], 1 }

</bundles_post_ra>
